<compile_context>
chip_gen: v7x
topology: tpu7x:2x2x1
jax: 0.10.0
libtpu: 0.0.40
codegen_flags: <defaults>
</compile_context>

<pallas_src>
import math
import numbers

import jax
import jax.numpy as jnp
import numpy as np
from jax.experimental import pallas as pl
from jax.experimental.pallas import tpu as pltpu


def _gaussian_taps(kernel_size, sigma, dim):
    """Reproduce the exact PyTorch GaussianFilter weight construction."""
    if isinstance(kernel_size, numbers.Number):
        kernel_size = [kernel_size] * dim
    if isinstance(sigma, numbers.Number):
        sigma = [sigma] * dim
    grids = np.meshgrid(
        *[np.arange(s, dtype=np.float32) for s in kernel_size], indexing="ij"
    )
    kernel = np.ones([], dtype=np.float32)
    for size, std, mgrid in zip(kernel_size, sigma, grids):
        mean = (size - 1) / 2.0
        # NOTE: exponent matches the original module exactly:
        #   exp(-((x - mean) / (2 * std)) ** 2)
        kernel = kernel * (
            1.0 / (std * math.sqrt(2.0 * math.pi))
            * np.exp(-(((mgrid - mean) / (2.0 * std)) ** 2))
        )
    kernel = kernel / kernel.sum()
    return np.asarray(kernel, dtype=np.float32), list(kernel_size)


def _make_depthwise_kernel(taps, out_h, out_w):
    kh, kw = taps.shape
    tap_list = [
        (dy, dx, float(taps[dy, dx])) for dy in range(kh) for dx in range(kw)
    ]

    def kernel(xpad_ref, o_ref):
        # xpad_ref: (1, C, H + kh - 1, W + kw - 1)  padded tile, one sample
        # o_ref   : (1, C, out_h, out_w)
        xpad = xpad_ref[...].astype(jnp.float32)
        acc = jnp.zeros(o_ref.shape, jnp.float32)
        for dy, dx, w in tap_list:  # static unrolled shift-and-accumulate
            acc = acc + w * xpad[:, :, dy:dy + out_h, dx:dx + out_w]
        o_ref[...] = acc.astype(o_ref.dtype)

    return kernel


def gaussian_filter_forward(x, channels=3, kernel_size=3, sigma=1.0,
                            dim=2, padding_mode="reflect"):
    """Pallas equivalent of GaussianFilter.forward. Returns a 1-tuple like torch."""
    if dim != 2:
        # TODO(synk): 1-D / 3-D depthwise Gaussian variants not implemented.
        raise NotImplementedError("Only dim=2 is implemented in Pallas.")

    taps, ksizes = _gaussian_taps(kernel_size, sigma, dim)
    kh, kw = ksizes
    pd = ksizes[0] // 2  # matches self.padding = kernel_size[0] // 2

    n, c, h, w = x.shape
    assert c == channels, "channel count must match the filter's `channels`"

    pad_mode = {
        "reflect": "reflect",
        "replicate": "edge",
        "circular": "wrap",
        "constant": "constant",
    }[padding_mode]
    xpad = jnp.pad(x, ((0, 0), (0, 0), (pd, pd), (pd, pd)), mode=pad_mode)
    hp, wp = h + 2 * pd, w + 2 * pd
    out_h, out_w = hp - kh + 1, wp - kw + 1  # == h, w for odd square kernels

    out = pl.pallas_call(
        _make_depthwise_kernel(taps, out_h, out_w),
        out_shape=jax.ShapeDtypeStruct((n, c, out_h, out_w), x.dtype),
        grid=(n,),
        in_specs=[pl.BlockSpec((1, c, hp, wp), lambda b: (b, 0, 0, 0))],
        out_specs=pl.BlockSpec((1, c, out_h, out_w), lambda b: (b, 0, 0, 0)),
        compiler_params=pltpu.CompilerParams(
            dimension_semantics=("parallel",)
        ),
    )(xpad)

    # The PyTorch module returns a tuple `(filtered,)`.
    return (out,)


if __name__ == "__main__":
    key = jax.random.PRNGKey(0)
    C, H, W = 3, 16, 16
    x = jax.random.normal(key, (2, C, H, W), dtype=jnp.float32)

    (out,) = gaussian_filter_forward(
        x, channels=C, kernel_size=3, sigma=1.0, dim=2, padding_mode="reflect"
    )
    out = jax.block_until_ready(out)

    # Pure-JAX reference: depthwise conv (feature_group_count=C) on the
    # reflect-padded input with identical tap weights.
    taps, (kh, kw) = _gaussian_taps(3, 1.0, 2)
    pd = kh // 2
    xp = jnp.pad(x, ((0, 0), (0, 0), (pd, pd), (pd, pd)), mode="reflect")
    wgt = jnp.tile(jnp.asarray(taps)[None, None], (C, 1, 1, 1))  # (C,1,kh,kw)
    ref = jax.lax.conv_general_dilated(
        xp, wgt, window_strides=(1, 1), padding="VALID",
        dimension_numbers=("NCHW", "OIHW", "NCHW"), feature_group_count=C,
    )

    assert out.shape == ref.shape == (2, C, H, W), (out.shape, ref.shape)
    max_err = float(jnp.max(jnp.abs(out - ref)))
    assert jnp.allclose(out, ref, rtol=1e-5, atol=1e-5), max_err
    print("KERNEL_OK")
</pallas_src>

<mosaic_0001>
module attributes {stable_mosaic.version = 11 : i64} {
  func.func @kernel(%arg0: i32, %arg1: memref<1x3x18x18xf32, #tpu.memory_space<vmem>>, %arg2: memref<1x3x16x16xf32, #tpu.memory_space<vmem>>) attributes {dimension_semantics = [#tpu.dimension_semantics<parallel>], iteration_bounds = array<i64: 2>, scalar_prefetch = 0 : i64, scratch_operands = 0 : i64, tpu.core_type = #tpu.core_type<tc>, window_params = [{transform_indices = @transform_0, window_bounds = array<i64: 1, 3, 18, 18>}, {transform_indices = @transform_1, window_bounds = array<i64: 1, 3, 16, 16>}]} {
    %c0 = arith.constant 0 : index
    %c0_0 = arith.constant 0 : index
    %c0_1 = arith.constant 0 : index
    %c0_2 = arith.constant 0 : index
    %0 = vector.load %arg1[%c0, %c0_0, %c0_1, %c0_2] : memref<1x3x18x18xf32, #tpu.memory_space<vmem>>, vector<1x3x18x18xf32>
    %cst = arith.constant 0.000000e+00 : f32
    %1 = vector.broadcast %cst : f32 to vector<1x3x16x16xf32>
    %2 = vector.extract_strided_slice %0 {offsets = [0, 0, 0, 0], sizes = [1, 3, 16, 16], strides = [1, 1, 1, 1]} : vector<1x3x18x18xf32> to vector<1x3x16x16xf32>
    %cst_3 = arith.constant 0.0927228927 : f32
    %3 = vector.broadcast %cst_3 : f32 to vector<1x3x16x16xf32>
    %4 = arith.mulf %3, %2 : vector<1x3x16x16xf32>
    %5 = arith.addf %1, %4 : vector<1x3x16x16xf32>
    %6 = vector.extract_strided_slice %0 {offsets = [0, 0, 0, 1], sizes = [1, 3, 16, 16], strides = [1, 1, 1, 1]} : vector<1x3x18x18xf32> to vector<1x3x16x16xf32>
    %cst_4 = arith.constant 0.119058557 : f32
    %7 = vector.broadcast %cst_4 : f32 to vector<1x3x16x16xf32>
    %8 = arith.mulf %7, %6 : vector<1x3x16x16xf32>
    %9 = arith.addf %5, %8 : vector<1x3x16x16xf32>
    %10 = vector.extract_strided_slice %0 {offsets = [0, 0, 0, 2], sizes = [1, 3, 16, 16], strides = [1, 1, 1, 1]} : vector<1x3x18x18xf32> to vector<1x3x16x16xf32>
    %cst_5 = arith.constant 0.0927228927 : f32
    %11 = vector.broadcast %cst_5 : f32 to vector<1x3x16x16xf32>
    %12 = arith.mulf %11, %10 : vector<1x3x16x16xf32>
    %13 = arith.addf %9, %12 : vector<1x3x16x16xf32>
    %14 = vector.extract_strided_slice %0 {offsets = [0, 0, 1, 0], sizes = [1, 3, 16, 16], strides = [1, 1, 1, 1]} : vector<1x3x18x18xf32> to vector<1x3x16x16xf32>
    %cst_6 = arith.constant 0.119058557 : f32
    %15 = vector.broadcast %cst_6 : f32 to vector<1x3x16x16xf32>
    %16 = arith.mulf %15, %14 : vector<1x3x16x16xf32>
    %17 = arith.addf %13, %16 : vector<1x3x16x16xf32>
    %18 = vector.extract_strided_slice %0 {offsets = [0, 0, 1, 1], sizes = [1, 3, 16, 16], strides = [1, 1, 1, 1]} : vector<1x3x18x18xf32> to vector<1x3x16x16xf32>
    %cst_7 = arith.constant 0.152874216 : f32
    %19 = vector.broadcast %cst_7 : f32 to vector<1x3x16x16xf32>
    %20 = arith.mulf %19, %18 : vector<1x3x16x16xf32>
    %21 = arith.addf %17, %20 : vector<1x3x16x16xf32>
    %22 = vector.extract_strided_slice %0 {offsets = [0, 0, 1, 2], sizes = [1, 3, 16, 16], strides = [1, 1, 1, 1]} : vector<1x3x18x18xf32> to vector<1x3x16x16xf32>
    %cst_8 = arith.constant 0.119058557 : f32
    %23 = vector.broadcast %cst_8 : f32 to vector<1x3x16x16xf32>
    %24 = arith.mulf %23, %22 : vector<1x3x16x16xf32>
    %25 = arith.addf %21, %24 : vector<1x3x16x16xf32>
    %26 = vector.extract_strided_slice %0 {offsets = [0, 0, 2, 0], sizes = [1, 3, 16, 16], strides = [1, 1, 1, 1]} : vector<1x3x18x18xf32> to vector<1x3x16x16xf32>
    %cst_9 = arith.constant 0.0927228927 : f32
    %27 = vector.broadcast %cst_9 : f32 to vector<1x3x16x16xf32>
    %28 = arith.mulf %27, %26 : vector<1x3x16x16xf32>
    %29 = arith.addf %25, %28 : vector<1x3x16x16xf32>
    %30 = vector.extract_strided_slice %0 {offsets = [0, 0, 2, 1], sizes = [1, 3, 16, 16], strides = [1, 1, 1, 1]} : vector<1x3x18x18xf32> to vector<1x3x16x16xf32>
    %cst_10 = arith.constant 0.119058557 : f32
    %31 = vector.broadcast %cst_10 : f32 to vector<1x3x16x16xf32>
    %32 = arith.mulf %31, %30 : vector<1x3x16x16xf32>
    %33 = arith.addf %29, %32 : vector<1x3x16x16xf32>
    %34 = vector.extract_strided_slice %0 {offsets = [0, 0, 2, 2], sizes = [1, 3, 16, 16], strides = [1, 1, 1, 1]} : vector<1x3x18x18xf32> to vector<1x3x16x16xf32>
    %cst_11 = arith.constant 0.0927228927 : f32
    %35 = vector.broadcast %cst_11 : f32 to vector<1x3x16x16xf32>
    %36 = arith.mulf %35, %34 : vector<1x3x16x16xf32>
    %37 = arith.addf %33, %36 : vector<1x3x16x16xf32>
    %c0_12 = arith.constant 0 : index
    %c0_13 = arith.constant 0 : index
    %c0_14 = arith.constant 0 : index
    %c0_15 = arith.constant 0 : index
    %38 = vector.load %arg2[%c0_12, %c0_13, %c0_14, %c0_15] : memref<1x3x16x16xf32, #tpu.memory_space<vmem>>, vector<1x3x16x16xf32>
    tpu.vector_store %arg2[%c0_12, %c0_13, %c0_14, %c0_15], %37 {strides = array<i32>} : memref<1x3x16x16xf32, #tpu.memory_space<vmem>>, vector<1x3x16x16xf32>,
    return
  }
  func.func @transform_0(%arg0: i32) -> (i32, i32, i32, i32) {
    %c0_i32 = arith.constant 0 : i32
    %c0_i32_0 = arith.constant 0 : i32
    %c0_i32_1 = arith.constant 0 : i32
    %c0_i32_2 = arith.constant 0 : i32
    return %arg0, %c0_i32, %c0_i32_0, %c0_i32_1 : i32, i32, i32, i32
  }
  func.func @transform_1(%arg0: i32) -> (i32, i32, i32, i32) {
    %c0_i32 = arith.constant 0 : i32
    %c0_i32_0 = arith.constant 0 : i32
    %c0_i32_1 = arith.constant 0 : i32
    %c0_i32_2 = arith.constant 0 : i32
    return %arg0, %c0_i32, %c0_i32_0, %c0_i32_1 : i32, i32, i32, i32
  }
}

</mosaic_0001>

<bundles_post_ra>
// kernel: tpu_custom_call.1
= control target key start
LH: loop header
LB: loop body
LE: loop exit
PB: predicated region body
PF: predicated region fallthrough
CT: control target
= control target key end

     0   :  { %6 = vsyncpa [#allocation3], 0  ;;  %s937_s0 = inlined_call_operand.vmem [shape: f32[2,3,18,18], index: 0, kind: input, shape index: {}]   ;;  %s938_s1 = inlined_call_operand.hbm [shape: f32[2,3,16,16], index: 1, kind: output, shape index: {}]  }
   0x1   :  { %8 = vsyncpa [#allocation3 + $0x1], 0  ;;  %s630_s6 = smov 0   ;;  %s632_s7 = smov 0  }
   0x2   :  { %s634_s8 = smov 0   ;;  %s636_s9 = smov 0  }
   0x3 LB: > { %s651_s10 = sadd.s32 4294967295, %s613_s9   ;;  %s497_s11 = sadd.s32 4294967294, %s613_s9   ;;  %s613_s9 = sphi %s636_s9, %s944_s9   ;;  %s609_s8 = sphi %s634_s8, %s943_s8   ;;  %s605_s7 = sphi %s632_s7, %s942_s7   ;;  %s601_s6 = sphi %s630_s6, %s941_s6  }
   0x4   : > { %s655_s12 = sadd.s32 1, %s613_s9   ;;  %s47_s13 = sadd.s32 1, %s609_s8 }
   0x5   : > { %s44_s14 = ssub.s32 %s613_s9, %s655_s12  ;;  %p57_p0 = scmp.ne.s32.totalorder %s609_s8, %s605_s7 }
   0x6   : > { %p45_p1 = scmp.eq.s32.totalorder %s44_s14, 0  ;;  %p58_p2 = scmp.eq.s32.totalorder %s651_s10, 1 }
   0x7   : > { %p63_p3 = scmp.ne.s32.totalorder %s605_s7, %s601_s6  ;;  %p64_p4 = scmp.eq.s32.totalorder %s497_s11, 1 }
   0x8   : > { %s666_s15 = scalar_select %p45_p1, %s609_s8, %s47_s13  }
   0x9   : > { %p668_p5 = por %p58_p2, %p57_p0  ;;  %p672_p6 = por %p64_p4, %p63_p3 }
   0xa   : > { %p500_p7 = scmp.ge.s32.totalorder %s613_s9, 1  ;;  %p90_p8 = scmp.lt.s32.totalorder %s613_s9, 3 }
   0xc   : > { %p91_p9 = pnand %p500_p7, %p90_p8 }
   0xd   : > { %p110_p10 = scmp.lt.s32.totalorder (!%p91_p9), %s651_s10, 1  ;;  %s615_s23 = smov (!%p91_p9), 127   ;;  %vm208_vm0 = vcmask (!%p91_p9), 1046528   ;;  %vm323_vm1 = vcmask (!%p91_p9), 1045504   ;;  %vm414_vm2 = vcmask (!%p91_p9), 130048  }
   0xe   : > { %94 = sbr.rel (%p91_p9) target bundleno = 229 (0xe5), region = 24  ;;  %s616_s24 = smov (!%p91_p9), 126  }
   0xf   : > { %s107_s25 = sand.u32 (!%p91_p9), 1, %s605_s7   ;;  %s507_s28 = smul.u32 (!%p91_p9), 768, %s651_s10 }
  0x10   : > { %s505_s26 = smul.u32 (!%p91_p9), 48, %s107_s25  ;;  %s896_s4 = scalar_lea.sflag (!%p91_p9), [#allocation3], %s107_s25 }
  0x11   : > { %s888_s3 = scalar_lea.hbm (!%p91_p9), %s938_s1, %s507_s28 }
  0x12   : > { %s109_s27 = scalar_lea.vmem (!%p91_p9), [#allocation2], %s505_s26 }
  0x13   : > { %s435_s29 = sshll.u32 (!%p91_p9), %s109_s27, 4  ;;  %s890_s29 = int_to_ptr.vmem [resolvable:$true] %s435_s29 }
  0x14   : > { %s551_s5 = scalar_lea.vmem (!%p91_p9), %s890_s29, 768 }
  0x15   : > { %s111_s18 = scalar_select %p110_p10, %s651_s10, 1 }
  0x16   : > { %p552_p11 = scmp.ne.s32.totalorder %s890_s29, %s551_s5  ;;  %s617_s10 = smov [#allocation2]  }
  0x17   : > { %s506_s19 = smul.u32 72, %s111_s18  ;;  %s555_s11 = sshll.u32 %s617_s10, 4  ;;  %s556_s11 = int_to_ptr.vmem [resolvable:$false] %s555_s11 }
  0x18   : > { %p553_p12 = pnand %p552_p11, %p668_p5  ;;  %s557_s13 = scalar_lea.vmem %s556_s11, 1536 }
  0x19   : > { %s683_s22 = scalar_lea.vmem %s937_s0, %s506_s19  ;;  %p558_p0 = scmp.lt.s32.totalorder %s890_s29, %s556_s11 }
  0x1a   : > { %v118_v0 = vld [vmem:[%s683_s22 + $0x18] sm:$0xff]  ;;  %v115_v1 = vld [vmem:[%s683_s22] sm:$0xff]  ;;  %v116_v5 = vld [vmem:[%s683_s22 + $0x8] sm:$0xff]  ;;  %p554_p13 = pneg %p553_p12  ;;  %p559_p1 = scmp.lt.s32.totalorder %s557_s13, %s551_s5 }
  0x1b   : > { %v119_v2 = vld [vmem:[%s683_s22 + $0x20] sm:$0xff]  ;;  %v688_v3 = vmul.f32 0.11905856, %v118_v0  ;;  %v690_v4 = vmul.f32 0.11905856, %v115_v1  ;;  %v122_v8 = vld [vmem:[%s683_s22 + $0x38] sm:$0xff] }
  0x1c   : > { %v697_v6 = vmul.f32 0.11905856, %v119_v2  ;;  %v699_v7 = vmul.f32 0.11905856, %v116_v5  ;;  %v121_v9 = vld [vmem:[%s683_s22 + $0x30] sm:$0xff]  ;;  %p560_p2 = por %p559_p1, %p558_p0 }
  0x1d   : > { %152 = vrot.lane.b32.xlu1 %v688_v3, %s615_s23  ;;  %148 = vrot.lane.b32.xlu0 %v690_v4, %s615_s23  ;;  %v707_v10 = vmul.f32 0.11905856, %v122_v8  ;;  %v709_v11 = vmul.f32 0.11905856, %v121_v9  ;;  %v715_v12 = vmul.f32 0.09272289, %v116_v5 }
  0x1e   : > { %v717_v13 = vmul.f32 0.09272289, %v115_v1  ;;  %v720_v14 = vld [vmem:[%s683_s22 + $0x10] sm:$0x3]  ;;  %v722_v15 = vmul.f32 0.09272289, %v119_v2  ;;  %p561_p3 = pnand %p560_p2, %p554_p13 }
  0x1f   : > { %v728_v16 = vmul.f32 0.09272289, %v118_v0  ;;  %v237_v17 = vmul.f32 0.15287422, %v116_v5  ;;  %v238_v18 = vmul.f32 0.15287422, %v720_v14 }
  0x20   : > { %v236_v19 = vmul.f32 0.15287422, %v115_v1  ;;  %v732_v20 = vld [vmem:[%s683_s22 + $0x28] sm:$0x3]  ;;  %v734_v21 = vmul.f32 0.09272289, %v122_v8 }
  0x21   : > { %154 = vrot.lane.b32.xlu1 %v697_v6, %s615_s23  ;;  %150 = vrot.lane.b32.xlu0 %v699_v7, %s615_s23  ;;  %v736_v22 = vmul.f32 0.09272289, %v121_v9  ;;  %v255_v23 = vrot.slane %v237_v17, 1  ;;  %v257_v24 = vrot.slane %v238_v18, 1  ;;  %v240_v25 = vmul.f32 0.15287422, %v119_v2 }
  0x22   : > { %v239_v26 = vmul.f32 0.15287422, %v118_v0  ;;  %v254_v27 = vrot.slane %v236_v19, 1  ;;  %v241_v28 = vmul.f32 0.15287422, %v732_v20  ;;  %v210_v44 = vrot.slane %v699_v7, 1 }
  0x23   : > { %v744_v29 = vld [vmem:[%s683_s22 + $0x40] sm:$0x3]  ;;  %v258_v30 = vsel %vm208_vm0, %v255_v23, %v257_v24  ;;  %v260_v31 = vrot.slane %v240_v25, 1  ;;  %v243_v33 = vmul.f32 0.15287422, %v122_v8  ;;  %v209_v45 = vrot.slane %v690_v4, 1 }
  0x24   : > { %v259_v32 = vrot.slane %v239_v26, 1  ;;  %v256_v34 = vsel %vm208_vm0, %v254_v27, %v255_v23  ;;  %v262_v35 = vrot.slane %v241_v28, 1  ;;  %v244_v36 = vmul.f32 0.15287422, %v744_v29 }
  0x25   : > { %158 = vrot.lane.b32.xlu1 %v707_v10, %s615_s23  ;;  %156 = vrot.lane.b32.xlu0 %v709_v11, %s615_s23  ;;  %v242_v37 = vmul.f32 0.15287422, %v121_v9  ;;  %v265_v39 = vrot.slane %v243_v33, 1  ;;  %v202_v43 = vmul.f32 0.11905856, %v720_v14  ;;  %v768_v50 = vsel %vm208_vm0, %v209_v45, %v210_v44 }
  0x26   : > { %v261_v38 = vsel %vm208_vm0, %v259_v32, %v260_v31  ;;  %v263_v40 = vsel %vm208_vm0, %v260_v31, %v262_v35  ;;  %v267_v41 = vrot.slane %v244_v36, 1  ;;  %v203_v49 = vmul.f32 0.11905856, %v732_v20 }
  0x27   : > { %v264_v42 = vrot.slane %v242_v37, 1  ;;  %v212_v48 = vrot.slane %v202_v43, 1  ;;  %v215_v51 = vrot.slane %v697_v6, 1  ;;  %v214_v54 = vrot.slane %v688_v3, 1 }
  0x28   : > { %v268_v46 = vsel %vm208_vm0, %v265_v39, %v267_v41  ;;  %v217_v53 = vrot.slane %v203_v49, 1  ;;  %v204_v55 = vmul.f32 0.11905856, %v744_v29  ;;  %v220_v56 = vrot.slane %v707_v10, 1 }
  0x29   : > { %180 = vrot.lane.b32.xlu1 %v715_v12, %s616_s24  ;;  %178 = vrot.lane.b32.xlu0 %v717_v13, %s616_s24  ;;  %v266_v47 = vsel %vm208_vm0, %v264_v42, %v265_v39  ;;  %v772_v52 = vsel %vm208_vm0, %v210_v44, %v212_v48  ;;  %v785_v58 = vsel %vm208_vm0, %v214_v54, %v215_v51  ;;  %v219_v60 = vrot.slane %v709_v11, 1 }
  0x2a   : > { %v782_v57 = vsel %vm208_vm0, %v215_v51, %v217_v53  ;;  %v222_v59 = vrot.slane %v204_v55, 1  ;;  %v352_v61 = vrot.slane %v699_v7, 2  ;;  %v354_v0 = vrot.slane %v202_v43, 2 }
  0x2b   : > { %v797_v63 = vsel %vm208_vm0, %v219_v60, %v220_v56  ;;  %v351_v1 = vrot.slane %v690_v4, 2  ;;  %v357_v2 = vrot.slane %v697_v6, 2  ;;  %v359_v8 = vrot.slane %v203_v49, 2 }
  0x2c   : > { %v794_v62 = vsel %vm208_vm0, %v220_v56, %v222_v59  ;;  %v355_v5 = vsel %vm323_vm1, %v352_v61, %v354_v0  ;;  %v356_v9 = vrot.slane %v688_v3, 2  ;;  %v362_v4 = vrot.slane %v707_v10, 2 }
  0x2d   : > { %184 = vrot.lane.b32.xlu1 %v722_v15, %s616_s24  ;;  %182 = vrot.lane.b32.xlu0 %v728_v16, %s616_s24  ;;  %v353_v7 = vsel %vm323_vm1, %v351_v1, %v352_v61  ;;  %v364_v17 = vrot.slane %v204_v55, 2  ;;  %v360_v18 = vsel %vm323_vm1, %v357_v2, %v359_v8  ;;  %v361_v6 = vrot.slane %v709_v11, 2 }
  0x2e   : > { %v358_v19 = vsel %vm323_vm1, %v356_v9, %v357_v2  ;;  %v317_v23 = vmul.f32 0.09272289, %v720_v14  ;;  %v325_v24 = vrot.slane %v715_v12, 2  ;;  %v324_v26 = vrot.slane %v717_v13, 2 }
  0x2f   : > { %v365_v3 = vsel %vm323_vm1, %v362_v4, %v364_v17  ;;  %v363_v25 = vsel %vm323_vm1, %v361_v6, %v362_v4  ;;  %v318_v27 = vmul.f32 0.09272289, %v732_v20  ;;  %v330_v11 = vrot.slane %v722_v15, 2 }
  0x30   : > { %v327_v10 = vrot.slane %v317_v23, 2  ;;  %v329_v14 = vrot.slane %v728_v16, 2  ;;  %v319_v32 = vmul.f32 0.09272289, %v744_v29  ;;  %v335_v20 = vrot.slane %v734_v21, 2 }
  0x31   : > { %188 = vrot.lane.b32.xlu1 %v734_v21, %s616_s24  ;;  %186 = vrot.lane.b32.xlu0 %v736_v22, %s616_s24  ;;  %v332_v31 = vrot.slane %v318_v27, 2  ;;  %v334_v36 = vrot.slane %v736_v22, 2 }
  0x32   : > { %v827_v28 = vsel %vm323_vm1, %v325_v24, %v327_v10  ;;  %v337_v35 = vrot.slane %v319_v32, 2 }
  0x33   : > { %v839_v33 = vsel %vm323_vm1, %v330_v11, %v332_v31  ;;  %v853_v37 = vsel %vm323_vm1, %v334_v36, %v335_v20 }
  0x34   : > { %v850_v29 = vsel %vm323_vm1, %v335_v20, %v337_v35 }
  0x35   : > { %271 = vrot.lane.b32.xlu1 %v258_v30, %s615_s23  ;;  %269 = vrot.lane.b32.xlu0 %v256_v34, %s615_s23  ;;  %v830_v30 = vsel %vm323_vm1, %v324_v26, %v325_v24  ;;  %v842_v34 = vsel %vm323_vm1, %v329_v14, %v330_v11 }
  0x39   : > { %275 = vrot.lane.b32.xlu1 %v263_v40, %s615_s23  ;;  %273 = vrot.lane.b32.xlu0 %v261_v38, %s615_s23 }
  0x3d   : > { %279 = vrot.lane.b32.xlu1 %v268_v46, %s615_s23  ;;  %277 = vrot.lane.b32.xlu0 %v266_v47, %s615_s23 }
  0x41   : > { %295 = vrot.lane.b32.xlu1 %v772_v52, %s616_s24  ;;  %293 = vrot.lane.b32.xlu0 %v768_v50, %s616_s24 }
  0x45   : > { %299 = vrot.lane.b32.xlu1 %v782_v57, %s616_s24  ;;  %297 = vrot.lane.b32.xlu0 %v785_v58, %s616_s24 }
  0x49   : > { %303 = vrot.lane.b32.xlu1 %v794_v62, %s616_s24  ;;  %301 = vrot.lane.b32.xlu0 %v797_v63, %s616_s24 }
  0x4d   : > { %368 = vrot.lane.b32.xlu1 %v355_v5, %s615_s23  ;;  %366 = vrot.lane.b32.xlu0 %v353_v7, %s615_s23 }
  0x51   : > { %372 = vrot.lane.b32.xlu1 %v360_v18, %s615_s23  ;;  %370 = vrot.lane.b32.xlu0 %v358_v19, %s615_s23 }
  0x55   : > { %376 = vrot.lane.b32.xlu1 %v365_v3, %s615_s23  ;;  %374 = vrot.lane.b32.xlu0 %v363_v25, %s615_s23 }
  0x59   : > { %392 = vrot.lane.b32.xlu1 %v827_v28, %s616_s24  ;;  %390 = vrot.lane.b32.xlu0 %v830_v30, %s616_s24 }
  0x5d   : > { %396 = vrot.lane.b32.xlu1 %v839_v33, %s616_s24  ;;  %394 = vrot.lane.b32.xlu0 %v842_v34, %s616_s24 }
  0x61   : > { %400 = vrot.lane.b32.xlu1 %v850_v29, %s616_s24  ;;  %398 = vrot.lane.b32.xlu0 %v853_v37, %s616_s24 }
  0x8f   : > { %v153_v38 = vpop.permute.xlu1 %152  ;;  %v149_v39 = vpop.permute.xlu0 %148 }
  0x90   : > { %v166_v2 = vadd.f32 %v149_v39, %v717_v13  ;;  %v168_v17 = vadd.f32 %v153_v38, %v728_v16 }
  0x93   : > { %v155_v40 = vpop.permute.xlu1 %154  ;;  %v151_v41 = vpop.permute.xlu0 %150 }
  0x94   : > { %v167_v5 = vadd.f32 %v151_v41, %v715_v12  ;;  %v169_v18 = vadd.f32 %v155_v40, %v722_v15 }
  0x97   : > { %v159_v42 = vpop.permute.xlu1 %158  ;;  %v157_v43 = vpop.permute.xlu0 %156 }
  0x98   : > { %v171_v13 = vadd.f32 %v159_v42, %v734_v21  ;;  %v170_v12 = vadd.f32 %v157_v43, %v736_v22 }
  0x9b   : > { %v181_v44 = vpop.permute.xlu1 %180  ;;  %v179_v45 = vpop.permute.xlu0 %178 }
  0x9c   : > { %v197_v9 = vadd.f32 %v181_v44, %v167_v5  ;;  %v196_v4 = vadd.f32 %v179_v45, %v166_v2 }
  0x9e   : > { %v231_v24 = vadd.f32 %v772_v52, %v197_v9  ;;  %v230_v25 = vadd.f32 %v768_v50, %v196_v4 }
  0x9f   : > { %v185_v46 = vpop.permute.xlu1 %184  ;;  %v183_v47 = vpop.permute.xlu0 %182 }
  0xa0   : > { %v199_v19 = vadd.f32 %v185_v46, %v169_v18  ;;  %v198_v6 = vadd.f32 %v183_v47, %v168_v17 }
  0xa2   : > { %v233_v16 = vadd.f32 %v782_v57, %v199_v19  ;;  %v232_v15 = vadd.f32 %v785_v58, %v198_v6 }
  0xa3   : > { %v189_v48 = vpop.permute.xlu1 %188  ;;  %v187_v49 = vpop.permute.xlu0 %186 }
  0xa4   : > { %v201_v14 = vadd.f32 %v189_v48, %v171_v13  ;;  %v200_v31 = vadd.f32 %v187_v49, %v170_v12 }
  0xa6   : > { %v235_v38 = vadd.f32 %v794_v62, %v201_v14  ;;  %v234_v57 = vadd.f32 %v797_v63, %v200_v31 }
  0xa7   : > { %v272_v51 = vpop.permute.xlu1 %271  ;;  %v270_v53 = vpop.permute.xlu0 %269 }
  0xa8   : > { %v288_v10 = vadd.f32 %v272_v51, %v231_v24  ;;  %v287_v26 = vadd.f32 %v270_v53, %v230_v25 }
  0xab   : > { %v276_v54 = vpop.permute.xlu1 %275  ;;  %v274_v55 = vpop.permute.xlu0 %273 }
  0xac   : > { %v290_v52 = vadd.f32 %v276_v54, %v233_v16  ;;  %v289_v50 = vadd.f32 %v274_v55, %v232_v15 }
  0xaf   : > { %v280_v56 = vpop.permute.xlu1 %279  ;;  %v278_v59 = vpop.permute.xlu0 %277 }
  0xb0   : > { %v292_v40 = vadd.f32 %v280_v56, %v235_v38  ;;  %v291_v41 = vadd.f32 %v278_v59, %v234_v57 }
  0xb3   : > { %v296_v60 = vpop.permute.xlu1 %295  ;;  %v294_v61 = vpop.permute.xlu0 %293 }
  0xb4   : > { %v312_v32 = vadd.f32 %v296_v60, %v288_v10  ;;  %v311_v20 = vadd.f32 %v294_v61, %v287_v26 }
  0xb6   : > { %v346_v58 = vadd.f32 %v827_v28, %v312_v32  ;;  %v345_v39 = vadd.f32 %v830_v30, %v311_v20 }
  0xb7   : > { %v300_v0 = vpop.permute.xlu1 %299  ;;  %v298_v1 = vpop.permute.xlu0 %297 }
  0xb8   : > { %v314_v35 = vadd.f32 %v300_v0, %v290_v52  ;;  %v313_v21 = vadd.f32 %v298_v1, %v289_v50 }
  0xba   : > { %v348_v44 = vadd.f32 %v839_v33, %v314_v35  ;;  %v347_v45 = vadd.f32 %v842_v34, %v313_v21 }
  0xbb   : > { %v304_v7 = vpop.permute.xlu1 %303  ;;  %v302_v8 = vpop.permute.xlu0 %301 }
  0xbc   : > { %v316_v48 = vadd.f32 %v304_v7, %v292_v40  ;;  %v315_v62 = vadd.f32 %v302_v8, %v291_v41 }
  0xbe   : > { %v350_v33 = vadd.f32 %v850_v29, %v316_v48  ;;  %v349_v34 = vadd.f32 %v853_v37, %v315_v62 }
  0xbf   : > { %v369_v23 = vpop.permute.xlu1 %368  ;;  %v367_v3 = vpop.permute.xlu0 %366 }
  0xc0   : > { %v385_v42 = vadd.f32 %v369_v23, %v346_v58  ;;  %v384_v43 = vadd.f32 %v367_v3, %v345_v39 }
  0xc3   : > { %v373_v27 = vpop.permute.xlu1 %372  ;;  %v371_v11 = vpop.permute.xlu0 %370 }
  0xc4   : > { %v387_v51 = vadd.f32 %v373_v27, %v348_v44  ;;  %v386_v28 = vadd.f32 %v371_v11, %v347_v45 }
  0xc7   : > { %v377_v36 = vpop.permute.xlu1 %376  ;;  %v375_v22 = vpop.permute.xlu0 %374 }
  0xc8   : > { %v389_v56 = vadd.f32 %v377_v36, %v350_v33  ;;  %v388_v59 = vadd.f32 %v375_v22, %v349_v34 }
  0xcb   : > { %v393_v46 = vpop.permute.xlu1 %392  ;;  %v391_v47 = vpop.permute.xlu0 %390 }
  0xcc   : > { %v409_v49 = vadd.f32 %v393_v46, %v385_v42  ;;  %v408_v63 = vadd.f32 %v391_v47, %v384_v43 }
  0xce   : > { %416 = vst.msk [vmem:[%s109_s27 + $0x8] sm:$0xff] %vm414_vm2, %v409_v49  ;;  %415 = vst.msk [vmem:[%s109_s27] sm:$0xff] %vm414_vm2, %v408_v63 }
  0xcf   : > { %v397_v30 = vpop.permute.xlu1 %396  ;;  %v395_v53 = vpop.permute.xlu0 %394 }
  0xd0   : > { %v411_v54 = vadd.f32 %v397_v30, %v387_v51  ;;  %v410_v55 = vadd.f32 %v395_v53, %v386_v28 }
  0xd2   : > { %418 = vst.msk [vmem:[%s109_s27 + $0x18] sm:$0xff] %vm414_vm2, %v411_v54  ;;  %417 = vst.msk [vmem:[%s109_s27 + $0x10] sm:$0xff] %vm414_vm2, %v410_v55 }
  0xd3   : > { %v401_v60 = vpop.permute.xlu1 %400  ;;  %v399_v61 = vpop.permute.xlu0 %398 }
  0xd4   : > { %v413_v29 = vadd.f32 %v401_v60, %v389_v56  ;;  %v412_v37 = vadd.f32 %v399_v61, %v388_v59 }
  0xd6   : > { %420 = vst.msk [vmem:[%s109_s27 + $0x28] sm:$0xff] %vm414_vm2, %v413_v29  ;;  %419 = vst.msk [vmem:[%s109_s27 + $0x20] sm:$0xff] %vm414_vm2, %v412_v37 }
  0xd7   : > { %564 = shalt.err (!%p561_p3)
}
  0xd8   : > { %s565_s14 = scalar_lea.hbm %s888_s3, 768  ;;  %s569_s20 = scalar_lea.hbm %s938_s1, 1536 }
  0xd9   : > { %p566_p4 = scmp.ne.s32.totalorder %s888_s3, %s565_s14  ;;  %p570_p9 = scmp.lt.u32.totalorder %s888_s3, %s938_s1 }
  0xda   : > { %p571_p10 = scmp.lt.u32.totalorder %s569_s20, %s565_s14  ;;  %p573_p12 = scmp.lt.u32.totalorder %s565_s14, %s888_s3 }
  0xdb   : > { %p567_p7 = pnand %p566_p4, %p668_p5 }
  0xdc   : > { %p572_p11 = por %p571_p10, %p570_p9 }
  0xdd   : > { %p568_p8 = pneg %p567_p7 }
  0xde   : > { %p574_p13 = por %p573_p12, %p572_p11 }
  0xe0   : > { %p575_p0 = pnand %p574_p13, %p568_p8 }
  0xe2   : > { %578 = shalt.err (!%p575_p0)
}
  0xe3   : > { %s618_s23 = smov 128   ;;  %s619_s24 = smov 8  }
  0xe4   : > { %508 = dma.vmem_to_hbm [thread:$0]  (%p668_p5), %s890_s29, 768, %s888_s3, %s896_s4, %s618_s23, %s618_s23, %s619_s24  }
  0xe5 PF: > { %p514_p1 = scmp.ge.s32.totalorder %s613_s9, 2  ;;  %s450_s25 = sand.u32 1, %s601_s6  }
  0xe6   : > { %s451_s26 = scalar_lea.sflag [#allocation3], %s450_s25 }
  0xe7   : > { %p511_p2 = pnand %p514_p1, %p672_p6 }
  0xe9   : > { %596 = dma.done.wait (!%p511_p2), %s451_s26, 768  }
  0xea   : > { %598 = vsyncadd (!%p511_p2), %s451_s26, 4294966528  ;;  %p11_p3 = scmp.ge.s32.totalorder %s655_s12, 4   ;;  %s941_s6 = smov %s605_s7 }
  0xeb   : > { %s942_s7 = smov %s609_s8  ;;  %s943_s8 = smov %s666_s15 }
  0xec   : > { %s944_s9 = smov %s655_s12  ;;  %13 = sbr.rel (!%p11_p3) target bundleno = 3 (0x3), region = 59 }
  0xf3   :  { %456 = vsyncpa [#allocation3], 1 }
  0xf4   :  { %458 = vsyncpa [#allocation3 + $0x1], 1 }

</bundles_post_ra>
